<compile_context>
chip_gen: v7x
topology: tpu7x:2x2x1
jax: 0.10.0
libtpu: 0.0.40
codegen_flags: <defaults>
</compile_context>

<pallas_src>
import jax
import jax.numpy as jnp
from jax.experimental import pallas as pl
from jax.experimental.pallas import tpu as pltpu

SUBLANE = 8


def _round_up(n, m):
    return ((n + m - 1) // m) * m


def dqn_kernel(x_ref, w1_ref, b1_ref, w2_ref, b2_ref, w3_ref, b3_ref, o_ref):
    """Fused MLP: relu(relu(x@W1+b1)@W2+b2)@W3+b3 on one batch tile."""
    wdt = w1_ref.dtype                          # MXU operand dtype (bf16 or f32)
    x = x_ref[...]                              # already cast in the wrapper
    # Layer 1: Linear + ReLU (f32 accumulation, f32 bias/ReLU on the VPU)
    h1 = jnp.dot(x, w1_ref[...], preferred_element_type=jnp.float32)
    h1 = jnp.maximum(h1 + b1_ref[...], 0.0)
    # Layer 2: Linear + ReLU
    h2 = jnp.dot(h1.astype(wdt), w2_ref[...], preferred_element_type=jnp.float32)
    h2 = jnp.maximum(h2 + b2_ref[...], 0.0)
    # Output layer: Linear (no activation)
    out = jnp.dot(h2.astype(wdt), w3_ref[...], preferred_element_type=jnp.float32)
    o_ref[...] = (out + b3_ref[...]).astype(o_ref.dtype)


def dqn_forward(x, params, *, use_bf16=True, batch_tile=2048, min_tiles=2):
    """Run the DQNNet forward pass via a single fused Pallas kernel.

    x: [B, input_dim] float32
    params: dict with w1,b1,w2,b2,w3,b3  (weights [in, out], biases [1, out])
    use_bf16: cast x/weights to bf16 for the MXU; accumulation stays f32.
    batch_tile: max rows per grid step; min_tiles: lower bound on grid steps
      (>=2 lets v7x's two TensorCores both get work when B is large enough).
    """
    B, in_dim = x.shape
    h1_dim = params["w1"].shape[1]
    h2_dim = params["w2"].shape[1]
    out_dim = params["w3"].shape[1]

    wdt = jnp.bfloat16 if use_bf16 else jnp.float32
    w1 = params["w1"].astype(wdt)
    w2 = params["w2"].astype(wdt)
    w3 = params["w3"].astype(wdt)
    b1 = params["b1"].astype(jnp.float32)
    b2 = params["b2"].astype(jnp.float32)
    b3 = params["b3"].astype(jnp.float32)

    # Batch tiling: sublane-align B, then pick balanced tiles.  Pad only to a
    # whole number of tiles (at most 7 * n_tiles junk rows).
    b8 = _round_up(B, SUBLANE)
    n_tiles = max(pl.cdiv(b8, batch_tile),
                  min_tiles if b8 >= 2 * SUBLANE else 1)
    tb = _round_up(pl.cdiv(b8, n_tiles), SUBLANE)
    grid_n = pl.cdiv(b8, tb)
    b_pad = grid_n * tb

    xp = jnp.pad(x, ((0, b_pad - B), (0, 0))).astype(wdt)

    resident = lambda i: (0, 0)   # weights/biases: same block every step -> VMEM-resident

    out_padded = pl.pallas_call(
        dqn_kernel,
        out_shape=jax.ShapeDtypeStruct((b_pad, out_dim), jnp.float32),
        grid=(grid_n,),
        in_specs=[
            pl.BlockSpec((tb, in_dim), lambda i: (i, 0)),    # x streams per tile
            pl.BlockSpec((in_dim, h1_dim), resident),
            pl.BlockSpec((1, h1_dim), resident),
            pl.BlockSpec((h1_dim, h2_dim), resident),
            pl.BlockSpec((1, h2_dim), resident),
            pl.BlockSpec((h2_dim, out_dim), resident),
            pl.BlockSpec((1, out_dim), resident),
        ],
        out_specs=pl.BlockSpec((tb, out_dim), lambda i: (i, 0)),
        compiler_params=pltpu.CompilerParams(
            dimension_semantics=("parallel",),   # shard batch tiles across v7x's 2 TCs
        ),
    )(xp, w1, b1, w2, b2, w3, b3)

    return out_padded[:B]


def init_params(key, input_dim, output_dim, hidden_layers=(64, 64)):
    """Deterministic PyTorch-Linear-style init: U(-1/sqrt(fan_in), 1/sqrt(fan_in))."""
    dims = [input_dim, *hidden_layers, output_dim]
    params = {}
    for i in range(len(dims) - 1):
        key, kw, kb = jax.random.split(key, 3)
        fan_in, fan_out = dims[i], dims[i + 1]
        bound = 1.0 / jnp.sqrt(fan_in)
        # Stored as [in, out] (transpose of PyTorch's [out, in]) for x @ W.
        params[f"w{i+1}"] = jax.random.uniform(
            kw, (fan_in, fan_out), jnp.float32, -bound, bound)
        params[f"b{i+1}"] = jax.random.uniform(
            kb, (1, fan_out), jnp.float32, -bound, bound)
    return params


def reference_forward(x, params):
    h1 = jnp.maximum(x @ params["w1"] + params["b1"], 0.0)
    h2 = jnp.maximum(h1 @ params["w2"] + params["b2"], 0.0)
    return h2 @ params["w3"] + params["b3"]


if __name__ == "__main__":
    key = jax.random.PRNGKey(0)
    key, kx1, kx2 = jax.random.split(key, 3)

    # Blackjack-like setup: state dim 3 (player sum, dealer card, usable ace),
    # 2 actions (hit / stick), hidden layers [64, 64].
    input_dim, output_dim = 3, 2
    params = init_params(key, input_dim, output_dim, hidden_layers=(64, 64))

    # --- small batch, f32 path (exact-match check, single-tile grid) ---
    x_small = jax.random.normal(kx1, (8, input_dim), jnp.float32)
    out_small = jax.block_until_ready(dqn_forward(x_small, params, use_bf16=False))
    ref_small = reference_forward(x_small, params)
    assert out_small.shape == (8, output_dim)
    assert jnp.allclose(out_small, ref_small, atol=1e-4, rtol=1e-4)

    # --- larger, non-multiple batch: exercises sublane batch padding, the
    #     balanced 2-tile grid (v7x both-TC path) and the default bf16 path ---
    x_big = jax.random.normal(kx2, (600, input_dim), jnp.float32)
    out_big = jax.block_until_ready(dqn_forward(x_big, params))
    ref_big = reference_forward(x_big, params)
    assert out_big.shape == (600, output_dim)
    assert jnp.allclose(out_big, ref_big, atol=5e-2, rtol=5e-2)  # bf16 quantization

    # --- same batch, f32 path with tight tolerance ---
    out_big_f32 = jax.block_until_ready(dqn_forward(x_big, params, use_bf16=False))
    assert jnp.allclose(out_big_f32, ref_big, atol=1e-4, rtol=1e-4)

    print("KERNEL_OK")
</pallas_src>

<mosaic_0001>
module attributes {stable_mosaic.version = 11 : i64} {
  func.func @dqn_kernel(%arg0: i32, %arg1: memref<8x3xf32, #tpu.memory_space<vmem>>, %arg2: memref<3x64xf32, #tpu.memory_space<vmem>>, %arg3: memref<1x64xf32, #tpu.memory_space<vmem>>, %arg4: memref<64x64xf32, #tpu.memory_space<vmem>>, %arg5: memref<1x64xf32, #tpu.memory_space<vmem>>, %arg6: memref<64x2xf32, #tpu.memory_space<vmem>>, %arg7: memref<1x2xf32, #tpu.memory_space<vmem>>, %arg8: memref<8x2xf32, #tpu.memory_space<vmem>>) attributes {dimension_semantics = [#tpu.dimension_semantics<parallel>], iteration_bounds = array<i64: 1>, scalar_prefetch = 0 : i64, scratch_operands = 0 : i64, tpu.core_type = #tpu.core_type<tc>, window_params = [{transform_indices = @transform_0, window_bounds = array<i64: 8, 3>}, {pipeline_mode = #tpu.pipeline_mode<synchronous>, transform_indices = @transform_1, window_bounds = array<i64: 3, 64>}, {pipeline_mode = #tpu.pipeline_mode<synchronous>, transform_indices = @transform_2, window_bounds = array<i64: 1, 64>}, {pipeline_mode = #tpu.pipeline_mode<synchronous>, transform_indices = @transform_3, window_bounds = array<i64: 64, 64>}, {pipeline_mode = #tpu.pipeline_mode<synchronous>, transform_indices = @transform_4, window_bounds = array<i64: 1, 64>}, {pipeline_mode = #tpu.pipeline_mode<synchronous>, transform_indices = @transform_5, window_bounds = array<i64: 64, 2>}, {pipeline_mode = #tpu.pipeline_mode<synchronous>, transform_indices = @transform_6, window_bounds = array<i64: 1, 2>}, {transform_indices = @transform_7, window_bounds = array<i64: 8, 2>}]} {
    %c0 = arith.constant 0 : index
    %c0_0 = arith.constant 0 : index
    %0 = vector.load %arg1[%c0, %c0_0] : memref<8x3xf32, #tpu.memory_space<vmem>>, vector<8x3xf32>
    %c0_1 = arith.constant 0 : index
    %c0_2 = arith.constant 0 : index
    %1 = vector.load %arg2[%c0_1, %c0_2] : memref<3x64xf32, #tpu.memory_space<vmem>>, vector<3x64xf32>
    %cst = arith.constant dense<0.000000e+00> : vector<8x64xf32>
    %2 = tpu.matmul %0, %1, %cst {dimension_numbers = #tpu.dot_dimension_numbers<[1], [0], [0], [1], [0, 0, 1, 1], [], []>} : vector<8x3xf32>, vector<3x64xf32>, vector<8x64xf32> -> vector<8x64xf32>
    %c0_3 = arith.constant 0 : index
    %c0_4 = arith.constant 0 : index
    %3 = vector.load %arg3[%c0_3, %c0_4] : memref<1x64xf32, #tpu.memory_space<vmem>>, vector<1x64xf32>
    %4 = vector.broadcast %3 : vector<1x64xf32> to vector<8x64xf32>
    %5 = arith.addf %2, %4 : vector<8x64xf32>
    %cst_5 = arith.constant 0.000000e+00 : f32
    %6 = vector.broadcast %cst_5 : f32 to vector<8x64xf32>
    %7 = arith.maximumf %5, %6 : vector<8x64xf32>
    %c0_6 = arith.constant 0 : index
    %c0_7 = arith.constant 0 : index
    %8 = vector.load %arg4[%c0_6, %c0_7] : memref<64x64xf32, #tpu.memory_space<vmem>>, vector<64x64xf32>
    %cst_8 = arith.constant dense<0.000000e+00> : vector<8x64xf32>
    %9 = tpu.matmul %7, %8, %cst_8 {dimension_numbers = #tpu.dot_dimension_numbers<[1], [0], [0], [1], [0, 0, 1, 1], [], []>} : vector<8x64xf32>, vector<64x64xf32>, vector<8x64xf32> -> vector<8x64xf32>
    %c0_9 = arith.constant 0 : index
    %c0_10 = arith.constant 0 : index
    %10 = vector.load %arg5[%c0_9, %c0_10] : memref<1x64xf32, #tpu.memory_space<vmem>>, vector<1x64xf32>
    %11 = vector.broadcast %10 : vector<1x64xf32> to vector<8x64xf32>
    %12 = arith.addf %9, %11 : vector<8x64xf32>
    %cst_11 = arith.constant 0.000000e+00 : f32
    %13 = vector.broadcast %cst_11 : f32 to vector<8x64xf32>
    %14 = arith.maximumf %12, %13 : vector<8x64xf32>
    %c0_12 = arith.constant 0 : index
    %c0_13 = arith.constant 0 : index
    %15 = vector.load %arg6[%c0_12, %c0_13] : memref<64x2xf32, #tpu.memory_space<vmem>>, vector<64x2xf32>
    %cst_14 = arith.constant dense<0.000000e+00> : vector<8x2xf32>
    %16 = tpu.matmul %14, %15, %cst_14 {dimension_numbers = #tpu.dot_dimension_numbers<[1], [0], [0], [1], [0, 0, 1, 1], [], []>} : vector<8x64xf32>, vector<64x2xf32>, vector<8x2xf32> -> vector<8x2xf32>
    %c0_15 = arith.constant 0 : index
    %c0_16 = arith.constant 0 : index
    %17 = vector.load %arg7[%c0_15, %c0_16] : memref<1x2xf32, #tpu.memory_space<vmem>>, vector<1x2xf32>
    %18 = vector.broadcast %17 : vector<1x2xf32> to vector<8x2xf32>
    %19 = arith.addf %16, %18 : vector<8x2xf32>
    %c0_17 = arith.constant 0 : index
    %c0_18 = arith.constant 0 : index
    %20 = vector.load %arg8[%c0_17, %c0_18] : memref<8x2xf32, #tpu.memory_space<vmem>>, vector<8x2xf32>
    tpu.vector_store %arg8[%c0_17, %c0_18], %19 {strides = array<i32>} : memref<8x2xf32, #tpu.memory_space<vmem>>, vector<8x2xf32>,
    return
  }
  func.func @transform_0(%arg0: i32) -> (i32, i32) {
    %c0_i32 = arith.constant 0 : i32
    %c0_i32_0 = arith.constant 0 : i32
    return %arg0, %c0_i32 : i32, i32
  }
  func.func @transform_1(%arg0: i32) -> (i32, i32) {
    %c0_i32 = arith.constant 0 : i32
    %c0_i32_0 = arith.constant 0 : i32
    %c0_i32_1 = arith.constant 0 : i32
    return %c0_i32, %c0_i32_0 : i32, i32
  }
  func.func @transform_2(%arg0: i32) -> (i32, i32) {
    %c0_i32 = arith.constant 0 : i32
    %c0_i32_0 = arith.constant 0 : i32
    %c0_i32_1 = arith.constant 0 : i32
    return %c0_i32, %c0_i32_0 : i32, i32
  }
  func.func @transform_3(%arg0: i32) -> (i32, i32) {
    %c0_i32 = arith.constant 0 : i32
    %c0_i32_0 = arith.constant 0 : i32
    %c0_i32_1 = arith.constant 0 : i32
    return %c0_i32, %c0_i32_0 : i32, i32
  }
  func.func @transform_4(%arg0: i32) -> (i32, i32) {
    %c0_i32 = arith.constant 0 : i32
    %c0_i32_0 = arith.constant 0 : i32
    %c0_i32_1 = arith.constant 0 : i32
    return %c0_i32, %c0_i32_0 : i32, i32
  }
  func.func @transform_5(%arg0: i32) -> (i32, i32) {
    %c0_i32 = arith.constant 0 : i32
    %c0_i32_0 = arith.constant 0 : i32
    %c0_i32_1 = arith.constant 0 : i32
    return %c0_i32, %c0_i32_0 : i32, i32
  }
  func.func @transform_6(%arg0: i32) -> (i32, i32) {
    %c0_i32 = arith.constant 0 : i32
    %c0_i32_0 = arith.constant 0 : i32
    %c0_i32_1 = arith.constant 0 : i32
    return %c0_i32, %c0_i32_0 : i32, i32
  }
  func.func @transform_7(%arg0: i32) -> (i32, i32) {
    %c0_i32 = arith.constant 0 : i32
    %c0_i32_0 = arith.constant 0 : i32
    return %arg0, %c0_i32 : i32, i32
  }
}

</mosaic_0001>

<bundles_post_ra>
// kernel: tpu_custom_call.1
= control target key start
LH: loop header
LB: loop body
LE: loop exit
PB: predicated region body
PF: predicated region fallthrough
CT: control target
= control target key end

     0   :  { %vm39_vm0 = vcmask 1042432   ;;  %vm35_vm1 = vcmask 23552   ;;  %v395_v0 = vmov 0.0   ;;  %vm396_vm2 = vmmov 0   ;;  %s504_s1 = inlined_call_operand.vmem [shape: f32[3,64], index: 1, kind: input, shape index: {}]   ;;  %s505_s0 = inlined_call_operand.vmem [shape: f32[8,3], index: 0, kind: input, shape index: {}]   ;;  %s506_s3 = inlined_call_operand.vmem [shape: f32[64,64], index: 3, kind: input, shape index: {}]   ;;  %s507_s5 = inlined_call_operand.vmem [shape: f32[64,2], index: 5, kind: input, shape index: {}]   ;;  %s508_s2 = inlined_call_operand.vmem [shape: f32[1,64], index: 2, kind: input, shape index: {}]   ;;  %s509_s4 = inlined_call_operand.vmem [shape: f32[1,64], index: 4, kind: input, shape index: {}]   ;;  %s510_s6 = inlined_call_operand.vmem [shape: f32[1,2], index: 6, kind: input, shape index: {}]   ;;  %s511_s7 = inlined_call_operand.vmem [shape: f32[8,2], index: 7, kind: output, shape index: {}]  }
   0x1   :  { %325 = vmatprep.subr.mxu0 %v395_v0  ;;  %v27_v1 = vld [vmem:[%s504_s1] sm:$0x7]  ;;  %327 = vmatprep.mubr.msk.f32.mxu0 %vm396_vm2, %v395_v0  ;;  %v397_v4 = vmov 0.0|0.0   ;;  %v115_v5 = vld [vmem:[%s506_s3 + $0x8] sm:$0xff]  ;;  %v116_v6 = vld [vmem:[%s506_s3 + $0x10] sm:$0xff]  ;;  %vm129_vm3 = vcmask 523264  }
   0x2   :  { %v26_v2 = vld [vmem:[%s505_s0] sm:$0xff]  ;;  %326 = vmatpush3.msk.msra.mxu0 %vm39_vm0, %v27_v1  ;;  %368 = vmatprep.subr.bf16.mxu1 %v397_v4  ;;  %v117_v7 = vld [vmem:[%s506_s3 + $0x18] sm:$0xff]  ;;  %v119_v11 = vld [vmem:[%s506_s3 + $0x28] sm:$0xff]  ;;  %vm292_vm4 = vcmask 15360  }
   0x3   :  { %v114_v3 = vld [vmem:[%s506_s3] sm:$0xff]  ;;  %328 = vmatmul.mubr.msk.f32.vlgmr.msra.gmra.mrb[0].mxu0 %vm35_vm1, %v26_v2  ;;  %346 = vmatprep.mubr.msk.f32.mxu1 %vm396_vm2, %v395_v0  ;;  %v372_v9 = vpack.c.bf16 %v117_v7, %v116_v6  ;;  %v120_v13 = vld [vmem:[%s506_s3 + $0x30] sm:$0xff]  ;;  %v121_v14 = vld [vmem:[%s506_s3 + $0x38] sm:$0xff] }
   0x4   :  { %v369_v8 = vpack.c.bf16 %v115_v5, %v114_v3  ;;  %380 = vmatprep.subr.bf16.mxu0 %v397_v4  ;;  %365 = vmatprep.mubr.msk.f32.mxu0 %vm396_vm2, %v395_v0  ;;  %v118_v10 = vld [vmem:[%s506_s3 + $0x20] sm:$0xff]  ;;  %v378_v15 = vpack.c.bf16 %v121_v14, %v120_v13  ;;  %v205_v17 = vld [vmem:[%s507_s5 + $0x8] sm:$0xff]  ;;  %v206_v18 = vld [vmem:[%s507_s5 + $0x10] sm:$0xff] }
   0x5   :  { %v375_v12 = vpack.c.bf16 %v119_v11, %v118_v10  ;;  %v204_v16 = vld [vmem:[%s507_s5] sm:$0xff]  ;;  %v207_v20 = vld [vmem:[%s507_s5 + $0x18] sm:$0xff]  ;;  %v209_v23 = vld [vmem:[%s507_s5 + $0x28] sm:$0xff] }
   0x6   :  { %370 = vmatpush3.bf16.msra.mxu1 %v369_v8  ;;  %v381_v19 = vpack.c.bf16 %v205_v17, %v204_v16  ;;  %v384_v21 = vpack.c.bf16 %v207_v20, %v206_v18  ;;  %v208_v22 = vld [vmem:[%s507_s5 + $0x20] sm:$0xff]  ;;  %v210_v30 = vld [vmem:[%s507_s5 + $0x30] sm:$0xff]  ;;  %v211_v31 = vld [vmem:[%s507_s5 + $0x38] sm:$0xff] }
   0x7   :  { %371 = vmatprep.subr.bf16.mxu1 %v397_v4  ;;  %v387_v24 = vpack.c.bf16 %v209_v23, %v208_v22  ;;  %v298_v25 = vld [vmem:[%s508_s2] ss:$0 sm:$0xff]  ;;  %v390_v32 = vpack.c.bf16 %v211_v31, %v210_v30 }
   0x8   :  { %382 = vmatpush3.bf16.msra.mxu0 %v381_v19  ;;  %v301_v33 = vld [vmem:[%s509_s4] ss:$0 sm:$0xff] }
   0x9   :  { %383 = vmatprep.subr.bf16.mxu0 %v397_v4  ;;  %v303_v38 = vld [vmem:[%s510_s6] ss:$0 sm:$0xff] }
   0xa   :  { %373 = vmatpush3.bf16.msra.mxu1 %v372_v9 }
   0xb   :  { %374 = vmatprep.subr.bf16.mxu1 %v397_v4 }
   0xc   :  { %385 = vmatpush3.bf16.msra.mxu0 %v384_v21 }
   0xd   :  { %386 = vmatprep.subr.bf16.mxu0 %v397_v4 }
   0xe   :  { %376 = vmatpush3.bf16.msra.mxu1 %v375_v12 }
   0xf   :  { %377 = vmatprep.subr.bf16.mxu1 %v397_v4 }
  0x10   :  { %388 = vmatpush3.bf16.msra.mxu0 %v387_v24 }
  0x11   :  { %389 = vmatprep.subr.bf16.mxu0 %v397_v4 }
  0x12   :  { %379 = vmatpush3.bf16.msra.mxu1 %v378_v15 }
  0x14   :  { %391 = vmatpush3.bf16.msra.mxu0 %v390_v32 }
  0xd6   :  { %v109_v26 = vpop.f32.mrb[0].mxu0 }
  0xd7   :  { %v110_v27 = vadd.f32 %v298_v25, %v109_v26  ;;  %v329_v28 = vpop.f32.mrb[1].mxu0 }
  0xd9   :  { %v113_v29 = vmax.f32 %v110_v27, 0.0 }
  0xdb   :  { %347 = vmatmul.mubr.msk.f32.vlgmr.msra.gmra.mrb[0].mxu1 %vm129_vm3, %v113_v29 }
 0x1ae   :  { %v199_v34 = vpop.f32.mrb[0].mxu1 }
 0x1af   :  { %v200_v35 = vadd.f32 %v301_v33, %v199_v34  ;;  %v348_v36 = vpop.f32.mrb[1].mxu1 }
 0x1b1   :  { %v203_v37 = vmax.f32 %v200_v35, 0.0 }
 0x1b3   :  { %366 = vmatmul.mubr.msk.f32.vlgmr.msra.gmra.mrb[2].mxu0 %vm129_vm3, %v203_v37 }
 0x286   :  { %v288_v39 = vpop.f32.mrb[2].mxu0 }
 0x287   :  { %v289_v40 = vadd.f32 %v303_v38, %v288_v39  ;;  %v367_v41 = vpop.f32.mrb[3].mxu0 }
 0x289   :  { %293 = vst.msk [vmem:[%s511_s7] sm:$0xff] %vm292_vm4, %v289_v40 }

</bundles_post_ra>
